<compile_context>
chip_gen: v5e
topology: v5e:2x2
jax: 0.10.0
libtpu: 0.0.40
codegen_flags: <defaults>
</compile_context>

<pallas_src>
import functools

import jax
import jax.numpy as jnp
from jax import lax
from jax.experimental import pallas as pl
from jax.experimental.pallas import tpu as pltpu


def _static_int_pow(x, n):
    """x ** n for a static non-negative integer n, via repeated squaring (VPU only)."""
    if n == 0:
        return jnp.ones_like(x)
    result = None
    base = x
    while n:
        if n & 1:
            result = base if result is None else result * base
        n >>= 1
        if n:
            base = base * base
    return result


def _focal_modulation(one_minus_pt, gamma):
    """(1 - pt) ** gamma. Integer gamma (incl. the default 2) avoids jnp.power's
    exp/log lowering; base is clamped at 0 to kill NaNs from pt rounding above 1."""
    base = jnp.maximum(one_minus_pt, 0.0)
    if float(gamma).is_integer() and 0 <= int(gamma) <= 16:
        return _static_int_pow(base, int(gamma))
    return jnp.power(base, gamma)


def _focal_loss_kernel(x_ref, t_ref, out_ref, *, gamma, ignore_index):
    # x_ref: (TN, C) logits (native dtype); t_ref: (TN, 1) int32 targets.
    tgt = t_ref[...]                                            # (TN, 1)

    # log-sum-exp pieces: exactly one exp per element; rest is VPU/XLU work.
    x = x_ref[...].astype(jnp.float32)                          # (TN, C)
    m = jnp.max(x, axis=-1, keepdims=True)                      # (TN, 1)
    xm = x - m                                                  # (TN, C); x dies here
    e = jnp.exp(xm)                                             # (TN, C)
    s = jnp.sum(e, axis=-1, keepdims=True)                      # (TN, 1)

    # Gather the target-class (shifted) logit with a one-hot select over xm:
    # the select yields x_t - m directly, so logpt_t = xm_t - log(s). The class
    # iota is (1, C); the compare broadcasts it against (TN, 1) targets.
    cls = lax.broadcasted_iota(jnp.int32, (1, xm.shape[1]), 1)  # (1, C)
    xm_t = jnp.sum(jnp.where(cls == tgt, xm, 0.0), axis=-1, keepdims=True)

    logpt_t = xm_t - jnp.log(s)                                 # log_softmax at target
    pt_t = jnp.exp(logpt_t)                                     # one exp per row
    focal_t = _focal_modulation(1.0 - pt_t, gamma) * logpt_t    # (TN, 1)

    valid = tgt != ignore_index
    part = jnp.sum(jnp.where(valid, -focal_t, 0.0))             # per-tile loss sum
    count = jnp.sum(jnp.where(valid, 1.0, 0.0))                 # per-tile valid count

    # Emit partials into a lane-dense, (8,128)-aligned block: loss sum at [0,0],
    # valid count at [0,1], zeros elsewhere; wrapper reduces over tiles.
    r = lax.broadcasted_iota(jnp.int32, (8, 128), 0)
    c = lax.broadcasted_iota(jnp.int32, (8, 128), 1)
    out_ref[0] = jnp.where(
        (r == 0) & (c == 0), part,
        jnp.where((r == 0) & (c == 1), count, 0.0))


def _pick_vmem_limit_bytes():
    """Generation-aware scoped VMEM limit: ~3/4 of physical VMEM per core.
    ~96 MiB on v5e/v6e (128 MiB), ~48 MiB on v7x (64 MiB)."""
    try:
        cap = int(pltpu.get_tpu_info().vmem_capacity_bytes)
    except Exception:  # pragma: no cover - conservative fallback (v7x-sized)
        cap = 64 * 1024 * 1024
    return (cap * 3) // 4


def _sublane_align(itemsize):
    """Rows per sublane group for the logits dtype: 8 (f32), 16 (bf16), 32 (8-bit)."""
    return max(8, 32 // max(1, int(itemsize)))


def _pick_token_tile(n_tokens, n_classes, itemsize, vmem_limit_bytes, align):
    """Largest token tile whose footprint fits the scoped VMEM limit with headroom.

    Budget per row: double-buffered logits (2*itemsize/elem) + ~16 B/elem of f32
    intermediates (x_f32 / xm / e / one-hot select result, not all live at once
    but budgeted conservatively) + double-buffered lane-padded int32 targets
    (2*512 B) + ~4 KiB of lane-padded (TN,1) f32 temporaries (m, s, logpt_t,
    pt_t, focal_t, ...). 8 MiB is reserved for compiler-internal scratch and
    the (tiny) double-buffered output block."""
    budget = max(vmem_limit_bytes - 8 * 1024 * 1024, 4 * 1024 * 1024)
    per_row = n_classes * (2 * itemsize + 16) + 2 * 512 + 4 * 1024
    tile = budget // per_row
    tile = min(tile, 8192)                                  # keep per-step compute bounded
    tile = min(tile, pl.cdiv(n_tokens, align) * align)      # don't over-pad tiny inputs
    tile = max(align, (tile // align) * align)
    return int(tile)


def focal_loss(logits, targets, *, gamma=2.0, ignore_index=-100, token_tile=None):
    """logits: [B, S, C] float; targets: [B, S] int. Returns scalar mean focal loss.

    Note: out-of-range targets that are not ignore_index contribute a 0-valued
    gathered logit (one-hot matches nothing) instead of raising like PyTorch.
    """
    B, S, C = logits.shape
    N = B * S
    # TODO(synk): per-class `weight` vector (module default is None) not wired in.

    # Keep logits in their native dtype (e.g. bf16) for the HBM->VMEM DMA.
    x = logits.reshape(N, C)
    t = targets.reshape(N, 1).astype(jnp.int32)

    vmem_limit = _pick_vmem_limit_bytes()
    align = _sublane_align(x.dtype.itemsize)
    if token_tile is None:
        token_tile = _pick_token_tile(N, C, x.dtype.itemsize, vmem_limit, align)
    else:
        token_tile = max(align, (int(token_tile) // align) * align)

    # Pad token count to a multiple of the tile with ignored rows (contribute 0
    # to both the loss sum and the valid-token count).
    num_tiles = pl.cdiv(N, token_tile)
    n_pad = num_tiles * token_tile
    if n_pad != N:
        x = jnp.pad(x, ((0, n_pad - N), (0, 0)))
        t = jnp.pad(t, ((0, n_pad - N), (0, 0)), constant_values=ignore_index)

    kernel = functools.partial(_focal_loss_kernel,
                               gamma=float(gamma),
                               ignore_index=int(ignore_index))

    partials = pl.pallas_call(
        kernel,
        out_shape=jax.ShapeDtypeStruct((num_tiles, 8, 128), jnp.float32),
        grid_spec=pltpu.PrefetchScalarGridSpec(
            num_scalar_prefetch=0,
            grid=(num_tiles,),
            in_specs=[
                pl.BlockSpec((token_tile, C), lambda i: (i, 0)),
                pl.BlockSpec((token_tile, 1), lambda i: (i, 0)),
            ],
            out_specs=pl.BlockSpec((1, 8, 128), lambda i: (i, 0, 0)),
        ),
        compiler_params=pltpu.CompilerParams(
            # tiles are fully independent -> megacore sharding on v7x
            dimension_semantics=("parallel",),
            vmem_limit_bytes=int(vmem_limit),
        ),
    )(x, t)

    num = jnp.sum(partials[:, 0, 0])
    den = jnp.sum(partials[:, 0, 1])
    # Matches F.nll_loss(reduction='mean'): NaN if every token is ignored.
    return num / den


def focal_loss_ref(logits, targets, *, gamma=2.0, ignore_index=-100):
    """Pure-JAX reference matching the PyTorch module."""
    logpt = jax.nn.log_softmax(logits.astype(jnp.float32), axis=-1)
    pt = jnp.exp(logpt)
    focal = jnp.power(1.0 - pt, gamma) * logpt
    C = logits.shape[-1]
    f = focal.reshape(-1, C)
    t = targets.reshape(-1)
    valid = t != ignore_index
    t_safe = jnp.where(valid, t, 0)
    picked = jnp.take_along_axis(f, t_safe[:, None], axis=-1)[:, 0]
    num = jnp.sum(jnp.where(valid, -picked, 0.0))
    den = jnp.sum(valid.astype(jnp.float32))
    return num / den


if __name__ == "__main__":
    key = jax.random.PRNGKey(0)
    k1, k2 = jax.random.split(key)

    # input: [Batch_size, Seq_len, Num_classes]
    B, S, C = 2, 8, 32
    logits = jax.random.normal(k1, (B, S, C), dtype=jnp.float32)
    targets = jax.random.randint(k2, (B, S), 0, C, dtype=jnp.int32)
    # sprinkle some ignored positions
    targets = targets.at[0, 3].set(-100).at[1, 5].set(-100)

    loss = jax.block_until_ready(focal_loss(logits, targets))
    ref = jax.block_until_ready(focal_loss_ref(logits, targets))
    assert jnp.isfinite(loss), "non-finite loss"
    assert jnp.allclose(loss, ref, rtol=1e-4, atol=1e-5), (loss, ref)

    # multi-tile path: "parallel" grid with 2 tiles + token padding (14 -> 16 rows)
    logits2 = jax.random.normal(k1, (2, 7, C), dtype=jnp.float32)
    targets2 = jax.random.randint(k2, (2, 7), 0, C, dtype=jnp.int32)
    loss2 = jax.block_until_ready(focal_loss(logits2, targets2, token_tile=8))
    ref2 = jax.block_until_ready(focal_loss_ref(logits2, targets2))
    assert jnp.allclose(loss2, ref2, rtol=1e-4, atol=1e-5), (loss2, ref2)

    # bf16 logits: exercises 16-row sublane alignment + in-kernel f32 cast
    logits3 = jax.random.normal(k1, (2, 24, C), dtype=jnp.bfloat16)
    targets3 = jax.random.randint(k2, (2, 24), 0, C, dtype=jnp.int32)
    targets3 = targets3.at[1, 0].set(-100)
    loss3 = jax.block_until_ready(focal_loss(logits3, targets3, token_tile=16))
    ref3 = jax.block_until_ready(focal_loss_ref(logits3, targets3))
    assert jnp.allclose(loss3, ref3, rtol=2e-2, atol=1e-3), (loss3, ref3)

    print("KERNEL_OK")
</pallas_src>

<mosaic_0001>
module attributes {stable_mosaic.version = 11 : i64} {
  func.func @_focal_loss_kernel(%arg0: i32, %arg1: memref<16x32xf32, #tpu.memory_space<vmem>>, %arg2: memref<16x1xi32, #tpu.memory_space<vmem>>, %arg3: memref<1x8x128xf32, #tpu.memory_space<vmem>>) attributes {dimension_semantics = [#tpu.dimension_semantics<parallel>], iteration_bounds = array<i64: 1>, scalar_prefetch = 0 : i64, scratch_operands = 0 : i64, tpu.core_type = #tpu.core_type<tc>, window_params = [{transform_indices = @transform_0, window_bounds = array<i64: 16, 32>}, {transform_indices = @transform_1, window_bounds = array<i64: 16, 1>}, {transform_indices = @transform_2, window_bounds = array<i64: 1, 8, 128>}]} {
    %c0 = arith.constant 0 : index
    %c0_0 = arith.constant 0 : index
    %0 = vector.load %arg2[%c0, %c0_0] : memref<16x1xi32, #tpu.memory_space<vmem>>, vector<16x1xi32>
    %c0_1 = arith.constant 0 : index
    %c0_2 = arith.constant 0 : index
    %1 = vector.load %arg1[%c0_1, %c0_2] : memref<16x32xf32, #tpu.memory_space<vmem>>, vector<16x32xf32>
    %cst = arith.constant dense<0xFF800000> : vector<16xf32>
    %2 = vector.multi_reduction <maximumf>, %1, %cst [1] : vector<16x32xf32> to vector<16xf32>
    %3 = vector.shape_cast %2 : vector<16xf32> to vector<16x1xf32>
    %4 = vector.broadcast %3 : vector<16x1xf32> to vector<16x32xf32>
    %5 = arith.subf %1, %4 : vector<16x32xf32>
    %6 = math.exp %5 : vector<16x32xf32>
    %cst_3 = arith.constant dense<0.000000e+00> : vector<16xf32>
    %7 = vector.multi_reduction <add>, %6, %cst_3 [1] : vector<16x32xf32> to vector<16xf32>
    %8 = vector.shape_cast %7 : vector<16xf32> to vector<16x1xf32>
    %9 = tpu.iota {dimensions = array<i32: 1>} : vector<1x32xi32>
    %10 = vector.broadcast %9 : vector<1x32xi32> to vector<16x32xi32>
    %11 = vector.broadcast %0 : vector<16x1xi32> to vector<16x32xi32>
    %12 = arith.cmpi eq, %10, %11 : vector<16x32xi32>
    %cst_4 = arith.constant 0.000000e+00 : f32
    %13 = vector.broadcast %cst_4 : f32 to vector<16x32xf32>
    %14 = arith.select %12, %5, %13 : vector<16x32xi1>, vector<16x32xf32>
    %cst_5 = arith.constant dense<0.000000e+00> : vector<16xf32>
    %15 = vector.multi_reduction <add>, %14, %cst_5 [1] : vector<16x32xf32> to vector<16xf32>
    %16 = vector.shape_cast %15 : vector<16xf32> to vector<16x1xf32>
    %17 = math.log %8 : vector<16x1xf32>
    %18 = arith.subf %16, %17 : vector<16x1xf32>
    %19 = math.exp %18 : vector<16x1xf32>
    %cst_6 = arith.constant 1.000000e+00 : f32
    %20 = vector.broadcast %cst_6 : f32 to vector<16x1xf32>
    %21 = arith.subf %20, %19 : vector<16x1xf32>
    %cst_7 = arith.constant 0.000000e+00 : f32
    %22 = vector.broadcast %cst_7 : f32 to vector<16x1xf32>
    %23 = arith.maximumf %21, %22 : vector<16x1xf32>
    %24 = arith.mulf %23, %23 : vector<16x1xf32>
    %25 = arith.mulf %24, %18 : vector<16x1xf32>
    %c-100_i32 = arith.constant -100 : i32
    %26 = vector.broadcast %c-100_i32 : i32 to vector<16x1xi32>
    %27 = arith.cmpi ne, %0, %26 : vector<16x1xi32>
    %cst_8 = arith.constant 0.000000e+00 : f32
    %28 = vector.broadcast %cst_8 : f32 to vector<16x1xf32>
    %29 = arith.subf %28, %25 : vector<16x1xf32>
    %cst_9 = arith.constant 0.000000e+00 : f32
    %30 = vector.broadcast %cst_9 : f32 to vector<16x1xf32>
    %31 = arith.select %27, %29, %30 : vector<16x1xi1>, vector<16x1xf32>
    %32 = vector.shape_cast %31 : vector<16x1xf32> to vector<1x16x1xf32>
    %cst_10 = arith.constant dense<0.000000e+00> : vector<1xf32>
    %33 = vector.multi_reduction <add>, %32, %cst_10 [1, 2] : vector<1x16x1xf32> to vector<1xf32>
    %34 = vector.shape_cast %33 : vector<1xf32> to vector<1x1x1xf32>
    %35 = vector.extract %34[0, 0, 0] : f32 from vector<1x1x1xf32>
    %cst_11 = arith.constant 1.000000e+00 : f32
    %cst_12 = arith.constant 0.000000e+00 : f32
    %36 = vector.broadcast %cst_11 : f32 to vector<16x1xf32>
    %37 = vector.broadcast %cst_12 : f32 to vector<16x1xf32>
    %38 = arith.select %27, %36, %37 : vector<16x1xi1>, vector<16x1xf32>
    %39 = vector.shape_cast %38 : vector<16x1xf32> to vector<1x16x1xf32>
    %cst_13 = arith.constant dense<0.000000e+00> : vector<1xf32>
    %40 = vector.multi_reduction <add>, %39, %cst_13 [1, 2] : vector<1x16x1xf32> to vector<1xf32>
    %41 = vector.shape_cast %40 : vector<1xf32> to vector<1x1x1xf32>
    %42 = vector.extract %41[0, 0, 0] : f32 from vector<1x1x1xf32>
    %43 = tpu.iota {dimensions = array<i32: 0>} : vector<8x128xi32>
    %44 = tpu.iota {dimensions = array<i32: 1>} : vector<8x128xi32>
    %c0_i32 = arith.constant 0 : i32
    %45 = vector.broadcast %c0_i32 : i32 to vector<8x128xi32>
    %46 = arith.cmpi eq, %43, %45 : vector<8x128xi32>
    %c0_i32_14 = arith.constant 0 : i32
    %47 = vector.broadcast %c0_i32_14 : i32 to vector<8x128xi32>
    %48 = arith.cmpi eq, %44, %47 : vector<8x128xi32>
    %49 = arith.andi %46, %48 : vector<8x128xi1>
    %c0_i32_15 = arith.constant 0 : i32
    %50 = vector.broadcast %c0_i32_15 : i32 to vector<8x128xi32>
    %51 = arith.cmpi eq, %43, %50 : vector<8x128xi32>
    %c1_i32 = arith.constant 1 : i32
    %52 = vector.broadcast %c1_i32 : i32 to vector<8x128xi32>
    %53 = arith.cmpi eq, %44, %52 : vector<8x128xi32>
    %54 = arith.andi %51, %53 : vector<8x128xi1>
    %cst_16 = arith.constant 0.000000e+00 : f32
    %55 = vector.broadcast %42 : f32 to vector<8x128xf32>
    %56 = vector.broadcast %cst_16 : f32 to vector<8x128xf32>
    %57 = arith.select %54, %55, %56 : vector<8x128xi1>, vector<8x128xf32>
    %58 = vector.broadcast %35 : f32 to vector<8x128xf32>
    %59 = arith.select %49, %58, %57 : vector<8x128xi1>, vector<8x128xf32>
    %c0_17 = arith.constant 0 : index
    %c0_18 = arith.constant 0 : index
    %c0_19 = arith.constant 0 : index
    %60 = vector.load %arg3[%c0_17, %c0_18, %c0_19] : memref<1x8x128xf32, #tpu.memory_space<vmem>>, vector<1x8x128xf32>
    %61 = vector.shape_cast %60 : vector<1x8x128xf32> to vector<8x128xf32>
    %62 = vector.shape_cast %59 : vector<8x128xf32> to vector<1x8x128xf32>
    tpu.vector_store %arg3[%c0_17, %c0_18, %c0_19], %62 {strides = array<i32>} : memref<1x8x128xf32, #tpu.memory_space<vmem>>, vector<1x8x128xf32>,
    return
  }
  func.func @transform_0(%arg0: i32) -> (i32, i32) {
    %c0_i32 = arith.constant 0 : i32
    %c0_i32_0 = arith.constant 0 : i32
    return %arg0, %c0_i32 : i32, i32
  }
  func.func @transform_1(%arg0: i32) -> (i32, i32) {
    %c0_i32 = arith.constant 0 : i32
    %c0_i32_0 = arith.constant 0 : i32
    return %arg0, %c0_i32 : i32, i32
  }
  func.func @transform_2(%arg0: i32) -> (i32, i32, i32) {
    %c0_i32 = arith.constant 0 : i32
    %c0_i32_0 = arith.constant 0 : i32
    %c0_i32_1 = arith.constant 0 : i32
    return %arg0, %c0_i32, %c0_i32_0 : i32, i32, i32
  }
}

</mosaic_0001>

<bundles_post_ra>
// kernel: tpu_custom_call.1
= control target key start
LH: loop header
LB: loop body
LE: loop exit
PB: predicated region body
PF: predicated region fallthrough
CT: control target
= control target key end

     0   :  { %vm16_vm0 = vcmask 261120   ;;  %v179_v3 = vmov 0   ;;  %s246_s0 = inlined_call_operand.vmem [shape: f32[16,32], index: 0, kind: input, shape index: {}]   ;;  %s247_s1 = inlined_call_operand.vmem [shape: s32[16,1], index: 1, kind: input, shape index: {}]   ;;  %s248_s2 = inlined_call_operand.hbm [shape: f32[1,8,128], index: 2, kind: output, shape index: {}]  }
   0x1   :  { %v14_v0 = vld [vmem:[%s246_s0] sm:$0xff]  ;;  %139 = vset.pattern.permute.xlu1 %v179_v3  ;;  %140 = vset.pattern.permute.xlu0 %v179_v3 }
   0x2   :  { %v203_v1 = vld [vmem:[%s247_s1] sm:$0xff]  ;;  %v17_v2 = vsel %vm16_vm0, %v14_v0, -inf }
   0x3   :  { %7 = vsyncpa [#allocation3], 0  ;;  %18 = vmax.xlane.f32.xlu0 %v17_v2  ;;  %38 = vperm.xlu1 %139, %v203_v1   ;;  %v15_v4 = vld [vmem:[%s246_s0 + $0x8] sm:$0xff]  ;;  %v35_v7 = vlaneseq  ;;  %vm71_vm3 = vcmp.ne.s32.totalorder %v203_v1, 4294967196  ;;  %v180_v25 = vmov 0.0   ;;  %vm77_vm5 = vcmask 7168  }
   0x4   :  { %v20_v5 = vsel %vm16_vm0, %v15_v4, -inf  ;;  %v214_v6 = vld [vmem:[%s247_s1 + $0x8] sm:$0xff]  ;;  %v90_v26 = vsel %vm71_vm3, 1.0, %v180_v25  ;;  %s181_s0 = smov [#allocation2]   ;;  %s123_s20 = sshll.u32 %s248_s2, 4  ;;  %s124_s20 = int_to_ptr.hbm [resolvable:$true] %s123_s20 }
   0x5   :  { %v218_v8 = vand.u32 127, %v35_v7  ;;  %vm72_vm4 = vcmp.ne.s32.totalorder %v214_v6, 4294967196  ;;  %v92_v28 = vsel %vm77_vm5, %v90_v26, 0.0  ;;  %s121_s1 = sshll.u32 %s181_s0, 4  ;;  %s122_s1 = int_to_ptr.vmem [resolvable:$true] %s121_s1 }
   0x6   :  { %v91_v27 = vsel %vm72_vm4, 1.0, %v180_v25 }
   0x7   :  { %v93_v29 = vsel %vm77_vm5, %v91_v27, 0.0  ;;  %vm109_vm7 = vcmp.eq.s32.totalorder %v218_v8, 1  ;;  %vm107_vm8 = vcmp.eq.s32.totalorder %v218_v8, 0 }
   0x8   :  { %v94_v30 = vadd.f32 %v93_v29, %v92_v28 }
   0xb   :  { %21 = vmax.xlane.f32.xlu0 %v20_v5  ;;  %41 = vperm.xlu1 %139, %v214_v6  }
  0x75   :  { %v39_v9 = vpop.permute.xlu1 %38 }
  0x76   :  { %v19_v10 = vpop.xlane.xlu0 %18  ;;  %vm43_vm1 = vcmp.eq.s32.totalorder %v218_v8, %v39_v9 }
  0x77   :  { %v23_v11 = vsub.f32 %v14_v0, %v19_v10 }
  0x79   :  { %v25_v12 = vmul.f32 1.442695, %v23_v11  ;;  %v45_v13 = vsel %vm43_vm1, %v23_v11, 0.0 }
  0x7a   :  { %v47_v14 = vsel %vm16_vm0, %v45_v13, 0.0 }
  0x7b   :  { %141 = vpow2.f32 %v25_v12  ;;  %48 = vadd.xlane.f32.xlu0 %v47_v14  ;;  %v105_v12 = vshrl.u32 %v35_v7, 7 }
  0x7d   :  { %v42_v15 = vpop.permute.xlu1 %41  ;;  %vm106_vm6 = vcmp.eq.s32.totalorder %v105_v12, 0 }
  0x7e   :  { %v22_v16 = vpop.xlane.xlu0 %21  ;;  %vm44_vm2 = vcmp.eq.s32.totalorder %v218_v8, %v42_v15  ;;  %vm110_vm9 = vmand %vm106_vm6, %vm109_vm7 }
  0x7f   :  { %v24_v17 = vsub.f32 %v15_v4, %v22_v16  ;;  %vm108_vm10 = vmand %vm106_vm6, %vm107_vm8 }
  0x81   :  { %v142_v18 = vpop.eup %141  ;;  %v27_v19 = vmul.f32 1.442695, %v24_v17  ;;  %v46_v20 = vsel %vm44_vm2, %v24_v17, 0.0 }
  0x82   :  { %v29_v21 = vsel %vm16_vm0, %v142_v18, 0.0  ;;  %v50_v22 = vsel %vm16_vm0, %v46_v20, 0.0 }
  0x83   :  { %143 = vpow2.f32 %v27_v19  ;;  %30 = vadd.xlane.f32.xlu2 %v29_v21  ;;  %51 = vadd.xlane.f32.xlu1 %v50_v22 }
  0x84   :  { %95 = vadd.xlane.f32.xlu0 %v94_v30 }
  0x89   :  { %v144_v23 = vpop.eup %143 }
  0x8a   :  { %v32_v24 = vsel %vm16_vm0, %v144_v23, 0.0 }
  0x8b   :  { %33 = vadd.xlane.f32.xlu2 %v32_v24 }
  0xee   :  { %v49_v35 = vpop.xlane.xlu0 %48 }
  0xf6   :  { %v31_v31 = vpop.xlane.xlu2 %30  ;;  %v52_v40 = vpop.xlane.xlu1 %51 }
  0xf7   :  { %145 = vlog2.f32 %v31_v31  ;;  %v96_v60 = vpop.xlane.xlu0 %95 }
  0xf8   :  { %v97_v61 = vrot.slane %v96_v60, 4 }
  0xfa   :  { %v98_v62 = vadd.f32 %v97_v61, %v96_v60 }
  0xfc   :  { %v99_v63 = vrot.slane %v98_v62, 2 }
  0xfd   :  { %v146_v32 = vpop.eup %145 }
  0xfe   :  { %v54_v33 = vmul.f32 0.6931472, %v146_v32  ;;  %v34_v34 = vpop.xlane.xlu2 %33  ;;  %v100_v4 = vadd.f32 %v99_v63, %v98_v62 }
  0xff   :  { %147 = vlog2.f32 %v34_v34 }
 0x100   :  { %v57_v36 = vsub.f32 %v49_v35, %v54_v33  ;;  %v101_v9 = vrot.slane %v100_v4, 1 }
 0x102   :  { %v59_v37 = vmul.f32 1.442695, %v57_v36  ;;  %v102_v11 = vadd.f32 %v101_v9, %v100_v4 }
 0x104   :  { %149 = vpow2.f32 %v59_v37 }
 0x105   :  { %v148_v38 = vpop.eup %147 }
 0x106   :  { %v56_v39 = vmul.f32 0.6931472, %v148_v38 }
 0x108   :  { %v58_v41 = vsub.f32 %v52_v40, %v56_v39 }
 0x10a   :  { %v150_v42 = vpop.eup %149  ;;  %v61_v43 = vmul.f32 1.442695, %v58_v41 }
 0x10b   :  { %v63_v44 = vsub.f32 1.0, %v150_v42 }
 0x10c   :  { %151 = vpow2.f32 %v61_v43 }
 0x10d   :  { %v65_v45 = vmax.f32 %v63_v44, 0.0 }
 0x10f   :  { %v67_v46 = vmul.f32 %v65_v45, %v65_v45 }
 0x111   :  { %v69_v49 = vmul.f32 %v67_v46, %v57_v36 }
 0x112   :  { %v152_v47 = vpop.eup %151 }
 0x113   :  { %v64_v48 = vsub.f32 1.0, %v152_v47  ;;  %v73_v52 = vsub.f32 0.0, %v69_v49 }
 0x115   :  { %v66_v50 = vmax.f32 %v64_v48, 0.0  ;;  %v75_v55 = vsel %vm71_vm3, %v73_v52, 0.0 }
 0x116   :  { %v78_v57 = vsel %vm77_vm5, %v75_v55, 0.0 }
 0x117   :  { %v68_v51 = vmul.f32 %v66_v50, %v66_v50 }
 0x119   :  { %v70_v53 = vmul.f32 %v68_v51, %v58_v41 }
 0x11b   :  { %v74_v54 = vsub.f32 0.0, %v70_v53 }
 0x11d   :  { %v76_v56 = vsel %vm72_vm4, %v74_v54, 0.0 }
 0x11e   :  { %v79_v58 = vsel %vm77_vm5, %v76_v56, 0.0 }
 0x11f   :  { %v80_v59 = vadd.f32 %v79_v58, %v78_v57 }
 0x121   :  { %81 = vadd.xlane.f32.xlu2 %v80_v59 }
 0x194   :  { %v82_v0 = vpop.xlane.xlu2 %81 }
 0x195   :  { %v83_v2 = vrot.slane %v82_v0, 4 }
 0x197   :  { %v84_v3 = vadd.f32 %v83_v2, %v82_v0 }
 0x199   :  { %v85_v5 = vrot.slane %v84_v3, 2 }
 0x19b   :  { %v86_v1 = vadd.f32 %v85_v5, %v84_v3 }
 0x19d   :  { %v87_v10 = vrot.slane %v86_v1, 1 }
 0x19f   :  { %v88_v6 = vadd.f32 %v87_v10, %v86_v1 }
 0x1a1   :  { %132 = vpush %v88_v6 }
 0x1a2   :  { %134 = vpush %v102_v11 }
 0x1d2   :  { %s133_s17 = spop %132 }
 0x1d3   :  { %v113_v13 = vstv %s133_s17  ;;  %s135_s21 = spop %134 }
 0x1d4   :  { %v111_v14 = vstv %s135_s21 }
 0x1d5   :  { %v112_v15 = vsel %vm110_vm9, %v111_v14, 0.0 }
 0x1d6   :  { %v114_v7 = vsel %vm108_vm10, %v113_v13, %v112_v15 }
 0x1d7   :  { %115 = vst [vmem:[#allocation2] sm:$0xff] %v114_v7 }
 0x1d8   :  { %126 = dma.vmem_to_hbm [thread:$0]  %s122_s1, 128, %s124_s20, [#allocation3]  }
 0x1d9   :  { %177 = dma.done.wait [#allocation3], 128  }
 0x1da   :  { %178 = vsyncadd [#allocation3], 4294967168 }
 0x1db   :  { %131 = vsyncpa [#allocation3], 1 }

</bundles_post_ra>
